<compile_context>
chip_gen: v6e
topology: v6e:2x2x1
jax: 0.10.0
libtpu: 0.0.40
codegen_flags: <defaults>
</compile_context>

<pallas_src>
import functools

import jax
import jax.numpy as jnp
from jax.experimental import pallas as pl
from jax.experimental.pallas import tpu as pltpu


def _conv1x1_relu_kernel(w_ref, b_ref, x_ref, o_ref, *, c_in, c_out):
    # w_ref: (C_out, C_in) f32 scalars in SMEM; b_ref: (C_out,) f32 in SMEM.
    # x_ref: (1, C_in, ho_t, Wo) f32 in VMEM; o_ref: (1, C_out, ho_t, Wo) f32.
    xs = [x_ref[0, ci] for ci in range(c_in)]          # C_in tiles of (ho_t, Wo)
    for co in range(c_out):
        acc = xs[0] * w_ref[co, 0]                     # VPU broadcast FMAs
        for ci in range(1, c_in):
            acc = acc + xs[ci] * w_ref[co, ci]
        acc = acc + b_ref[co]
        o_ref[0, co] = jnp.maximum(acc, 0.0)           # fused bias + ReLU


def conv1x1_stride_relu(x_nchw, weight, bias, *, stride=2):
    """x_nchw: (N, C_in, H, W) f32; weight: (C_out, C_in); bias: (C_out,)."""
    n, c_in, h, w = x_nchw.shape
    c_out = weight.shape[0]

    # 1x1 conv with stride s == per-pixel channel matmul on the subsampled
    # grid.  Single strided slice in the same jit region; kernel reads/writes
    # NCHW directly (no transpose, no pad, no post-processing).
    xs = x_nchw[:, :, ::stride, ::stride]              # (N, C_in, Ho, Wo)
    ho, wo = xs.shape[2], xs.shape[3]

    # Rows per grid step: largest multiple-of-8 tile dividing Ho (legal
    # second-to-last block dim); fall back to full Ho otherwise.  The lane dim
    # is always the full Wo, which is legal for any Wo and lane-dense when
    # Wo >= 128.  Blocks stay <= ~1 MiB, well inside every generation's VMEM
    # (incl. v7x's 32 MiB scoped default).
    ho_t = next((t for t in (128, 64, 32, 16, 8) if ho % t == 0), ho)
    grid = (n, ho // ho_t)

    kernel = functools.partial(_conv1x1_relu_kernel, c_in=c_in, c_out=c_out)

    return pl.pallas_call(
        kernel,
        out_shape=jax.ShapeDtypeStruct((n, c_out, ho, wo), jnp.float32),
        grid_spec=pltpu.PrefetchScalarGridSpec(
            num_scalar_prefetch=0,
            grid=grid,
            in_specs=[
                # 12 weights + 4 biases as SMEM scalars.
                pl.BlockSpec(memory_space=pltpu.MemorySpace.SMEM),
                pl.BlockSpec(memory_space=pltpu.MemorySpace.SMEM),
                pl.BlockSpec((1, c_in, ho_t, wo), lambda nb, hb: (nb, 0, hb, 0)),
            ],
            out_specs=pl.BlockSpec((1, c_out, ho_t, wo),
                                   lambda nb, hb: (nb, 0, hb, 0)),
        ),
        compiler_params=pltpu.CompilerParams(
            dimension_semantics=("parallel", "parallel")),
    )(weight.astype(jnp.float32), bias.astype(jnp.float32),
      xs.astype(jnp.float32))


def reference(x_nchw, weight, bias, stride=2):
    xs = x_nchw[:, :, ::stride, ::stride]
    y = jnp.einsum("nchw,oc->nohw", xs, weight) + bias[None, :, None, None]
    return jnp.maximum(y, 0.0)


if __name__ == "__main__":
    key = jax.random.PRNGKey(0)
    kx, kw, kb = jax.random.split(key, 3)

    # Small shapes consistent with Conv2d(3, 4, 1, stride=2); 256x256 spatial
    # so the 128-wide output width exercises the lane-dense path.
    N, C_IN, H, W = 2, 3, 256, 256
    C_OUT = 4

    x = jax.random.normal(kx, (N, C_IN, H, W), dtype=jnp.float32)
    # Deterministic, PyTorch-like uniform init (fan_in = C_in * 1 * 1 = 3).
    bound = 1.0 / (C_IN ** 0.5)
    weight = jax.random.uniform(kw, (C_OUT, C_IN), jnp.float32, -bound, bound)
    bias = jax.random.uniform(kb, (C_OUT,), jnp.float32, -bound, bound)

    fn = jax.jit(conv1x1_stride_relu)
    out = jax.block_until_ready(fn(x, weight, bias))

    ref = reference(x, weight, bias)
    assert out.shape == (N, C_OUT, H // 2, W // 2), out.shape
    assert jnp.allclose(out, ref, atol=1e-5, rtol=1e-5), "mismatch vs reference"

    print("KERNEL_OK")
</pallas_src>

<mosaic_0001>
module attributes {stable_mosaic.version = 11 : i64} {
  func.func @_conv1x1_relu_kernel(%arg0: i32, %arg1: i32, %arg2: memref<4x3xf32, #tpu.memory_space<smem>>, %arg3: memref<4xf32, #tpu.memory_space<smem>>, %arg4: memref<1x3x128x128xf32, #tpu.memory_space<vmem>>, %arg5: memref<1x4x128x128xf32, #tpu.memory_space<vmem>>) attributes {dimension_semantics = [#tpu.dimension_semantics<parallel>, #tpu.dimension_semantics<parallel>], iteration_bounds = array<i64: 2, 1>, scalar_prefetch = 0 : i64, scratch_operands = 0 : i64, tpu.core_type = #tpu.core_type<tc>, window_params = [{transform_indices = @transform_0, window_bounds = array<i64: 4, 3>}, {transform_indices = @transform_1, window_bounds = array<i64: 4>}, {transform_indices = @transform_2, window_bounds = array<i64: 1, 3, 128, 128>}, {transform_indices = @transform_3, window_bounds = array<i64: 1, 4, 128, 128>}]} {
    %c0 = arith.constant 0 : index
    %c0_0 = arith.constant 0 : index
    %c0_1 = arith.constant 0 : index
    %c0_2 = arith.constant 0 : index
    %0 = vector.load %arg4[%c0, %c0_0, %c0_1, %c0_2] : memref<1x3x128x128xf32, #tpu.memory_space<vmem>>, vector<1x1x128x128xf32>
    %1 = vector.shape_cast %0 : vector<1x1x128x128xf32> to vector<128x128xf32>
    %c0_3 = arith.constant 0 : index
    %c1 = arith.constant 1 : index
    %c0_4 = arith.constant 0 : index
    %c0_5 = arith.constant 0 : index
    %2 = vector.load %arg4[%c0_3, %c1, %c0_4, %c0_5] : memref<1x3x128x128xf32, #tpu.memory_space<vmem>>, vector<1x1x128x128xf32>
    %3 = vector.shape_cast %2 : vector<1x1x128x128xf32> to vector<128x128xf32>
    %c0_6 = arith.constant 0 : index
    %c2 = arith.constant 2 : index
    %c0_7 = arith.constant 0 : index
    %c0_8 = arith.constant 0 : index
    %4 = vector.load %arg4[%c0_6, %c2, %c0_7, %c0_8] : memref<1x3x128x128xf32, #tpu.memory_space<vmem>>, vector<1x1x128x128xf32>
    %5 = vector.shape_cast %4 : vector<1x1x128x128xf32> to vector<128x128xf32>
    %c0_9 = arith.constant 0 : index
    %c0_10 = arith.constant 0 : index
    %6 = memref.load %arg2[%c0_9, %c0_10] : memref<4x3xf32, #tpu.memory_space<smem>>
    %7 = vector.broadcast %6 : f32 to vector<128x128xf32>
    %8 = arith.mulf %1, %7 : vector<128x128xf32>
    %c0_11 = arith.constant 0 : index
    %c1_12 = arith.constant 1 : index
    %9 = memref.load %arg2[%c0_11, %c1_12] : memref<4x3xf32, #tpu.memory_space<smem>>
    %10 = vector.broadcast %9 : f32 to vector<128x128xf32>
    %11 = arith.mulf %3, %10 : vector<128x128xf32>
    %12 = arith.addf %8, %11 : vector<128x128xf32>
    %c0_13 = arith.constant 0 : index
    %c2_14 = arith.constant 2 : index
    %13 = memref.load %arg2[%c0_13, %c2_14] : memref<4x3xf32, #tpu.memory_space<smem>>
    %14 = vector.broadcast %13 : f32 to vector<128x128xf32>
    %15 = arith.mulf %5, %14 : vector<128x128xf32>
    %16 = arith.addf %12, %15 : vector<128x128xf32>
    %c0_15 = arith.constant 0 : index
    %17 = memref.load %arg3[%c0_15] : memref<4xf32, #tpu.memory_space<smem>>
    %18 = vector.broadcast %17 : f32 to vector<128x128xf32>
    %19 = arith.addf %16, %18 : vector<128x128xf32>
    %cst = arith.constant 0.000000e+00 : f32
    %20 = vector.broadcast %cst : f32 to vector<128x128xf32>
    %21 = arith.maximumf %19, %20 : vector<128x128xf32>
    %c0_16 = arith.constant 0 : index
    %c0_17 = arith.constant 0 : index
    %c0_18 = arith.constant 0 : index
    %c0_19 = arith.constant 0 : index
    %22 = vector.load %arg5[%c0_16, %c0_17, %c0_18, %c0_19] : memref<1x4x128x128xf32, #tpu.memory_space<vmem>>, vector<1x1x128x128xf32>
    %23 = vector.shape_cast %22 : vector<1x1x128x128xf32> to vector<128x128xf32>
    %24 = vector.shape_cast %21 : vector<128x128xf32> to vector<1x1x128x128xf32>
    tpu.vector_store %arg5[%c0_16, %c0_17, %c0_18, %c0_19], %24 {strides = array<i32>} : memref<1x4x128x128xf32, #tpu.memory_space<vmem>>, vector<1x1x128x128xf32>,
    %c1_20 = arith.constant 1 : index
    %c0_21 = arith.constant 0 : index
    %25 = memref.load %arg2[%c1_20, %c0_21] : memref<4x3xf32, #tpu.memory_space<smem>>
    %26 = vector.broadcast %25 : f32 to vector<128x128xf32>
    %27 = arith.mulf %1, %26 : vector<128x128xf32>
    %c1_22 = arith.constant 1 : index
    %c1_23 = arith.constant 1 : index
    %28 = memref.load %arg2[%c1_22, %c1_23] : memref<4x3xf32, #tpu.memory_space<smem>>
    %29 = vector.broadcast %28 : f32 to vector<128x128xf32>
    %30 = arith.mulf %3, %29 : vector<128x128xf32>
    %31 = arith.addf %27, %30 : vector<128x128xf32>
    %c1_24 = arith.constant 1 : index
    %c2_25 = arith.constant 2 : index
    %32 = memref.load %arg2[%c1_24, %c2_25] : memref<4x3xf32, #tpu.memory_space<smem>>
    %33 = vector.broadcast %32 : f32 to vector<128x128xf32>
    %34 = arith.mulf %5, %33 : vector<128x128xf32>
    %35 = arith.addf %31, %34 : vector<128x128xf32>
    %c1_26 = arith.constant 1 : index
    %36 = memref.load %arg3[%c1_26] : memref<4xf32, #tpu.memory_space<smem>>
    %37 = vector.broadcast %36 : f32 to vector<128x128xf32>
    %38 = arith.addf %35, %37 : vector<128x128xf32>
    %cst_27 = arith.constant 0.000000e+00 : f32
    %39 = vector.broadcast %cst_27 : f32 to vector<128x128xf32>
    %40 = arith.maximumf %38, %39 : vector<128x128xf32>
    %c0_28 = arith.constant 0 : index
    %c1_29 = arith.constant 1 : index
    %c0_30 = arith.constant 0 : index
    %c0_31 = arith.constant 0 : index
    %41 = vector.load %arg5[%c0_28, %c1_29, %c0_30, %c0_31] : memref<1x4x128x128xf32, #tpu.memory_space<vmem>>, vector<1x1x128x128xf32>
    %42 = vector.shape_cast %41 : vector<1x1x128x128xf32> to vector<128x128xf32>
    %43 = vector.shape_cast %40 : vector<128x128xf32> to vector<1x1x128x128xf32>
    tpu.vector_store %arg5[%c0_28, %c1_29, %c0_30, %c0_31], %43 {strides = array<i32>} : memref<1x4x128x128xf32, #tpu.memory_space<vmem>>, vector<1x1x128x128xf32>,
    %c2_32 = arith.constant 2 : index
    %c0_33 = arith.constant 0 : index
    %44 = memref.load %arg2[%c2_32, %c0_33] : memref<4x3xf32, #tpu.memory_space<smem>>
    %45 = vector.broadcast %44 : f32 to vector<128x128xf32>
    %46 = arith.mulf %1, %45 : vector<128x128xf32>
    %c2_34 = arith.constant 2 : index
    %c1_35 = arith.constant 1 : index
    %47 = memref.load %arg2[%c2_34, %c1_35] : memref<4x3xf32, #tpu.memory_space<smem>>
    %48 = vector.broadcast %47 : f32 to vector<128x128xf32>
    %49 = arith.mulf %3, %48 : vector<128x128xf32>
    %50 = arith.addf %46, %49 : vector<128x128xf32>
    %c2_36 = arith.constant 2 : index
    %c2_37 = arith.constant 2 : index
    %51 = memref.load %arg2[%c2_36, %c2_37] : memref<4x3xf32, #tpu.memory_space<smem>>
    %52 = vector.broadcast %51 : f32 to vector<128x128xf32>
    %53 = arith.mulf %5, %52 : vector<128x128xf32>
    %54 = arith.addf %50, %53 : vector<128x128xf32>
    %c2_38 = arith.constant 2 : index
    %55 = memref.load %arg3[%c2_38] : memref<4xf32, #tpu.memory_space<smem>>
    %56 = vector.broadcast %55 : f32 to vector<128x128xf32>
    %57 = arith.addf %54, %56 : vector<128x128xf32>
    %cst_39 = arith.constant 0.000000e+00 : f32
    %58 = vector.broadcast %cst_39 : f32 to vector<128x128xf32>
    %59 = arith.maximumf %57, %58 : vector<128x128xf32>
    %c0_40 = arith.constant 0 : index
    %c2_41 = arith.constant 2 : index
    %c0_42 = arith.constant 0 : index
    %c0_43 = arith.constant 0 : index
    %60 = vector.load %arg5[%c0_40, %c2_41, %c0_42, %c0_43] : memref<1x4x128x128xf32, #tpu.memory_space<vmem>>, vector<1x1x128x128xf32>
    %61 = vector.shape_cast %60 : vector<1x1x128x128xf32> to vector<128x128xf32>
    %62 = vector.shape_cast %59 : vector<128x128xf32> to vector<1x1x128x128xf32>
    tpu.vector_store %arg5[%c0_40, %c2_41, %c0_42, %c0_43], %62 {strides = array<i32>} : memref<1x4x128x128xf32, #tpu.memory_space<vmem>>, vector<1x1x128x128xf32>,
    %c3 = arith.constant 3 : index
    %c0_44 = arith.constant 0 : index
    %63 = memref.load %arg2[%c3, %c0_44] : memref<4x3xf32, #tpu.memory_space<smem>>
    %64 = vector.broadcast %63 : f32 to vector<128x128xf32>
    %65 = arith.mulf %1, %64 : vector<128x128xf32>
    %c3_45 = arith.constant 3 : index
    %c1_46 = arith.constant 1 : index
    %66 = memref.load %arg2[%c3_45, %c1_46] : memref<4x3xf32, #tpu.memory_space<smem>>
    %67 = vector.broadcast %66 : f32 to vector<128x128xf32>
    %68 = arith.mulf %3, %67 : vector<128x128xf32>
    %69 = arith.addf %65, %68 : vector<128x128xf32>
    %c3_47 = arith.constant 3 : index
    %c2_48 = arith.constant 2 : index
    %70 = memref.load %arg2[%c3_47, %c2_48] : memref<4x3xf32, #tpu.memory_space<smem>>
    %71 = vector.broadcast %70 : f32 to vector<128x128xf32>
    %72 = arith.mulf %5, %71 : vector<128x128xf32>
    %73 = arith.addf %69, %72 : vector<128x128xf32>
    %c3_49 = arith.constant 3 : index
    %74 = memref.load %arg3[%c3_49] : memref<4xf32, #tpu.memory_space<smem>>
    %75 = vector.broadcast %74 : f32 to vector<128x128xf32>
    %76 = arith.addf %73, %75 : vector<128x128xf32>
    %cst_50 = arith.constant 0.000000e+00 : f32
    %77 = vector.broadcast %cst_50 : f32 to vector<128x128xf32>
    %78 = arith.maximumf %76, %77 : vector<128x128xf32>
    %c0_51 = arith.constant 0 : index
    %c3_52 = arith.constant 3 : index
    %c0_53 = arith.constant 0 : index
    %c0_54 = arith.constant 0 : index
    %79 = vector.load %arg5[%c0_51, %c3_52, %c0_53, %c0_54] : memref<1x4x128x128xf32, #tpu.memory_space<vmem>>, vector<1x1x128x128xf32>
    %80 = vector.shape_cast %79 : vector<1x1x128x128xf32> to vector<128x128xf32>
    %81 = vector.shape_cast %78 : vector<128x128xf32> to vector<1x1x128x128xf32>
    tpu.vector_store %arg5[%c0_51, %c3_52, %c0_53, %c0_54], %81 {strides = array<i32>} : memref<1x4x128x128xf32, #tpu.memory_space<vmem>>, vector<1x1x128x128xf32>,
    return
  }
  func.func @transform_0(%arg0: i32, %arg1: i32) -> (i32, i32) {
    %c0_i32 = arith.constant 0 : i32
    %c0_i32_0 = arith.constant 0 : i32
    %c0_i32_1 = arith.constant 0 : i32
    return %c0_i32, %c0_i32_0 : i32, i32
  }
  func.func @transform_1(%arg0: i32, %arg1: i32) -> i32 {
    %c0_i32 = arith.constant 0 : i32
    %c0_i32_0 = arith.constant 0 : i32
    return %c0_i32 : i32
  }
  func.func @transform_2(%arg0: i32, %arg1: i32) -> (i32, i32, i32, i32) {
    %c0_i32 = arith.constant 0 : i32
    %c0_i32_0 = arith.constant 0 : i32
    %c0_i32_1 = arith.constant 0 : i32
    return %arg0, %c0_i32, %arg1, %c0_i32_0 : i32, i32, i32, i32
  }
  func.func @transform_3(%arg0: i32, %arg1: i32) -> (i32, i32, i32, i32) {
    %c0_i32 = arith.constant 0 : i32
    %c0_i32_0 = arith.constant 0 : i32
    %c0_i32_1 = arith.constant 0 : i32
    return %arg0, %c0_i32, %arg1, %c0_i32_0 : i32, i32, i32, i32
  }
}

</mosaic_0001>

<bundles_post_ra>
// kernel: conv1x1_stride_relu.1
= control target key start
LH: loop header
LB: loop body
LE: loop exit
PB: predicated region body
PF: predicated region fallthrough
CT: control target
= control target key end

     0   :  { %8 = vsyncpa [#allocation4], 0  ;;  %s2116_s0 = inlined_call_operand.hbm [shape: f32[4,3], index: 0, kind: input, shape index: {}]   ;;  %s2117_s1 = inlined_call_operand.hbm [shape: f32[4], index: 1, kind: input, shape index: {}]   ;;  %s2118_s2 = inlined_call_operand.vmem [shape: f32[2,3,128,128], index: 2, kind: input, shape index: {}]   ;;  %s2119_s3 = inlined_call_operand.hbm [shape: f32[2,4,128,128], index: 3, kind: output, shape index: {}]  }
   0x1   :  { %9 = vsyncpa [#allocation6], 0 }
   0x2   :  { %10 = vsyncpa [#allocation3], 0 }
   0x3   :  { %12 = vsyncpa [#allocation3 + $0x1], 0  ;;  %s1260_s12 = smov 0   ;;  %s1262_s13 = smov 0  }
   0x4   :  { %s1264_s14 = smov 0   ;;  %s1266_s15 = smov 0  }
   0x5   :  { %s1268_s16 = smov 0   ;;  %s1270_s17 = smov 0  }
   0x6 LB: > { %s937_s18 = sadd.s32 4294967295, %s1233_s17   ;;  %s938_s19 = sadd.s32 4294967294, %s1233_s17   ;;  %s1233_s17 = sphi %s1270_s17, %s18_s17   ;;  %s1229_s16 = sphi %s1268_s16, %s2176_s16   ;;  %s1225_s15 = sphi %s1266_s15, %s2175_s15   ;;  %s1221_s14 = sphi %s1264_s14, %s2174_s14   ;;  %s1217_s13 = sphi %s1262_s13, %s2173_s13   ;;  %s1213_s12 = sphi %s1260_s12, %s2172_s12  }
   0x7   : > { %s30_s20 = sadd.s32 1, %s1229_s16  ;;  %s109_s21 = sadd.s32 1, %s1221_s14 }
   0x8   : > { %p32_p0 = scmp.ge.s32.totalorder %s30_s20, 2  ;;  %p119_p1 = scmp.ne.s32.totalorder %s1221_s14, %s1217_s13 }
   0x9   : > { %p120_p2 = scmp.eq.s32.totalorder %s937_s18, 1  ;;  %p125_p3 = scmp.ne.s32.totalorder %s1217_s13, %s1213_s12 }
   0xa   : > { %s2178_s20 = smov (%p32_p0, %s30_s20), 0  ;;  %p126_p5 = scmp.eq.s32.totalorder %s938_s19, 1 }
   0xb   : > { %p1300_p4 = por %p120_p2, %p119_p1  ;;  %s104_s23 = ssub.s32 %s1229_s16, %s2178_s20 }
   0xc   : > { %p939_p6 = scmp.ge.s32.totalorder %s1233_s17, 1  ;;  %p107_p7 = scmp.eq.s32.totalorder %s104_s23, 0 }
   0xd   : > { %p1307_p8 = por %p126_p5, %p125_p3  ;;  %p133_p9 = scmp.lt.s32.totalorder %s1233_s17, 3 }
   0xe   : > { %s1313_s25 = scalar_select %p107_p7, %s1221_s14, %s109_s21  }
   0xf   : > { %p134_p10 = pnand %p939_p6, %p133_p9  ;;  %p1070_p11 = scmp.eq.s32.totalorder %s937_s18, 0 }
  0x10   : > { %s1235_s26 = smov [#allocation2]   ;;  %s1236_s29 = smov [#allocation5]  }
  0x11   : > { %p1059_p12 = pneg %p134_p10 }
  0x12   : > { %179 = sbr.rel (%p134_p10) target bundleno = 172 (0xac), region = 32 }
  0x13   : > { %p1060_p13 = pnand %p1070_p11, %p1059_p12 }
  0x15   : > { %1062 = dma.hbm_to_smem (!%p1060_p13), %s2116_s0, 64, %s1235_s26, [#allocation4]  }
  0x16   : > { %1065 = dma.hbm_to_smem (!%p1060_p13), %s2117_s1, 16, %s1236_s29, [#allocation6]  }
  0x17   : > { %1200 = dma.done.wait (%p1070_p11), [#allocation4], 64  }
  0x18   : > { %1202 = vsyncadd (%p1070_p11), [#allocation4], 4294967232 }
  0x19   : > { %1204 = dma.done.wait (%p1070_p11), [#allocation6], 16  }
  0x1a   : > { %1206 = vsyncadd (%p1070_p11), [#allocation6], 4294967280 }
  0x1b   : > { %189 = sfence }
  0x1c   : > { %p213_p0 = scmp.lt.s32.totalorder %s1225_s15, 1  ;;  %s273_s5 = sld [smem:[#allocation2]] }
  0x1d   : > { %s980_s6 = sld [smem:[#allocation2 + $0x1]]  ;;  %s209_s21 = sand.u32 1, %s1217_s13  }
  0x1e   : > { %s214_s7 = scalar_select %p213_p0, %s1225_s15, 1 }
  0x1f   : > { %s981_s8 = sld [smem:[#allocation2 + $0x2]]  ;;  %s1402_s23 = sshll.u32 %s209_s21, 9 }
  0x20   : > { %s1048_s9 = smul.u32 384, %s214_s7  ;;  %s359_s10 = sld [smem:[#allocation5]] }
  0x21   : > { %s1458_s26 = scalar_lea.vmem [#allocation7], %s1402_s23  ;;  %s1540_s27 = sld [smem:[#allocation2 + $0x80]] }
  0x22   : > { %s1326_s19 = scalar_lea.vmem %s2118_s2, %s1048_s9  ;;  %v1328_v0 = vstv %s273_s5  ;;  %s1553_s28 = sld [smem:[#allocation2 + $0x81]] }
  0x23   : > { %v1331_v1 = vld [vmem:[%s1326_s19] sm:$0xff]  ;;  %v1339_v4 = vstv %s980_s6  ;;  %v1346_v7 = vld [vmem:[%s1326_s19 + $0x8] sm:$0xff]  ;;  %v1362_v13 = vld [vmem:[%s1326_s19 + $0x10] sm:$0xff]  ;;  %s1560_s29 = sld [smem:[#allocation2 + $0x82]]  ;;  %s1047_s18 = sshll.u32 %s1225_s15, 13 }
  0x24   : > { %v1334_v2 = vld [vmem:[%s1326_s19 + $0x80] sm:$0xff]  ;;  %v275_v5 = vmul.f32 %v1328_v0, %v1331_v1  ;;  %v1349_v8 = vld [vmem:[%s1326_s19 + $0x88] sm:$0xff]  ;;  %v276_v11 = vmul.f32 %v1328_v0, %v1346_v7  ;;  %v1365_v14 = vld [vmem:[%s1326_s19 + $0x90] sm:$0xff]  ;;  %v277_v24 = vmul.f32 %v1328_v0, %v1362_v13  ;;  %s1575_s30 = sld [smem:[#allocation5 + $0x1]]  ;;  %s2071_s15 = scalar_lea.sflag [#allocation3], %s209_s21 }
  0x25   : > { %v1337_v3 = vld [vmem:[%s1326_s19 + $0x100] sm:$0xff]  ;;  %v293_v6 = vmul.f32 %v1334_v2, %v1339_v4  ;;  %2142 = vst [vmem:[#allocation11_spill] sm:$0xff] %v1349_v8  ;;  %v1352_v9 = vld [vmem:[%s1326_s19 + $0x108] sm:$0xff]  ;;  %v1355_v10 = vstv %s981_s8  ;;  %v294_v12 = vmul.f32 %v1349_v8, %v1339_v4  ;;  %v1368_v15 = vld [vmem:[%s1326_s19 + $0x110] sm:$0xff]  ;;  %v295_v25 = vmul.f32 %v1365_v14, %v1339_v4  ;;  %s1718_s4 = sld [smem:[#allocation2 + $0x100]] }
  0x26   : > { %v327_v17 = vmul.f32 %v1337_v3, %v1355_v10  ;;  %v1372_v18 = vstv %s359_s10  ;;  %v328_v19 = vmul.f32 %v1352_v9, %v1355_v10  ;;  %v1377_v20 = vld [vmem:[%s1326_s19 + $0x18] sm:$0xff]  ;;  %v329_v26 = vmul.f32 %v1368_v15, %v1355_v10  ;;  %v1392_v27 = vld [vmem:[%s1326_s19 + $0x20] sm:$0xff]  ;;  %v1411_v34 = vld [vmem:[%s1326_s19 + $0x28] sm:$0xff]  ;;  %s1722_s5 = sld [smem:[#allocation2 + $0x101]] }
  0x27   : > { %v309_v16 = vadd.f32 %v293_v6, %v275_v5  ;;  %2143 = vst [vmem:[#allocation12_spill] sm:$0xff] %v1377_v20  ;;  %v1380_v21 = vld [vmem:[%s1326_s19 + $0x98] sm:$0xff]  ;;  %v310_v23 = vadd.f32 %v294_v12, %v276_v11  ;;  %v1395_v28 = vld [vmem:[%s1326_s19 + $0xa0] sm:$0xff]  ;;  %v278_v31 = vmul.f32 %v1328_v0, %v1377_v20  ;;  %2147 = vst [vmem:[#allocation16_spill] sm:$0xff] %v1411_v34  ;;  %s1729_s6 = sld [smem:[#allocation2 + $0x102]] }
  0x28   : > { %2144 = vst [vmem:[#allocation13_spill] sm:$0xff] %v1380_v21  ;;  %v1383_v22 = vld [vmem:[%s1326_s19 + $0x118] sm:$0xff]  ;;  %2145 = vst [vmem:[#allocation14_spill] sm:$0xff] %v1395_v28  ;;  %v1398_v29 = vld [vmem:[%s1326_s19 + $0x120] sm:$0xff]  ;;  %v296_v32 = vmul.f32 %v1380_v21, %v1339_v4  ;;  %v311_v37 = vadd.f32 %v295_v25, %v277_v24  ;;  %v279_v38 = vmul.f32 %v1328_v0, %v1392_v27  ;;  %s1735_s7 = sld [smem:[#allocation5 + $0x2]] }
  0x29   : > { %2146 = vst [vmem:[#allocation15_spill] sm:$0xff] %v1398_v29  ;;  %v343_v30 = vadd.f32 %v327_v17, %v309_v16  ;;  %v330_v33 = vmul.f32 %v1383_v22, %v1355_v10  ;;  %v1414_v35 = vld [vmem:[%s1326_s19 + $0xa8] sm:$0xff]  ;;  %v344_v36 = vadd.f32 %v328_v19, %v310_v23  ;;  %v297_v39 = vmul.f32 %v1395_v28, %v1339_v4  ;;  %v1424_v41 = vld [vmem:[%s1326_s19 + $0x30] sm:$0xff]  ;;  %v1441_v52 = vld [vmem:[%s1326_s19 + $0x38] sm:$0xff]  ;;  %s1866_s8 = sld [smem:[#allocation2 + $0x180]] }
  0x2a   : > { %v1421_v40 = vld [vmem:[%s1326_s19 + $0x128] sm:$0xff]  ;;  %v312_v43 = vadd.f32 %v296_v32, %v278_v31  ;;  %v331_v44 = vmul.f32 %v1398_v29, %v1355_v10  ;;  %v280_v45 = vmul.f32 %v1328_v0, %v1411_v34  ;;  %v345_v47 = vadd.f32 %v329_v26, %v311_v37  ;;  %v1435_v50 = vld [vmem:[%s1326_s19 + $0xb0] sm:$0xff]  ;;  %v1448_v57 = vld [vmem:[%s1326_s19 + $0xb8] sm:$0xff]  ;;  %s1870_s9 = sld [smem:[#allocation2 + $0x181]] }
  0x2b   : > { %v361_v42 = vadd.f32 %v1372_v18, %v343_v30  ;;  %v362_v46 = vadd.f32 %v1372_v18, %v344_v36  ;;  %v313_v48 = vadd.f32 %v297_v39, %v279_v38  ;;  %v298_v49 = vmul.f32 %v1414_v35, %v1339_v4  ;;  %v1438_v51 = vld [vmem:[%s1326_s19 + $0x130] sm:$0xff]  ;;  %v1452_v62 = vld [vmem:[%s1326_s19 + $0x138] sm:$0xff]  ;;  %v1455_v63 = vld [vmem:[%s1326_s19 + $0x40] sm:$0xff]  ;;  %s1877_s10 = sld [smem:[#allocation2 + $0x182]] }
  0x2c   : > { %v346_v54 = vadd.f32 %v330_v33, %v312_v43  ;;  %v332_v55 = vmul.f32 %v1421_v40, %v1355_v10  ;;  %v281_v56 = vmul.f32 %v1328_v0, %v1424_v41  ;;  %v363_v59 = vadd.f32 %v1372_v18, %v345_v47  ;;  %v1469_v16 = vld [vmem:[%s1326_s19 + $0xc0] sm:$0xff]  ;;  %v1479_v26 = vld [vmem:[%s1326_s19 + $0x48] sm:$0xff]  ;;  %s1883_s11 = sld [smem:[#allocation5 + $0x3]] }
  0x2d   : > { %v377_v53 = vmax.f32 %v361_v42, 0.0  ;;  %v378_v58 = vmax.f32 %v362_v46, 0.0  ;;  %v347_v60 = vadd.f32 %v331_v44, %v313_v48  ;;  %v314_v61 = vadd.f32 %v298_v49, %v280_v45  ;;  %v1476_v25 = vld [vmem:[%s1326_s19 + $0x140] sm:$0xff]  ;;  %v1482_v30 = vld [vmem:[%s1326_s19 + $0xc8] sm:$0xff]  ;;  %v1496_v44 = vld [vmem:[%s1326_s19 + $0x50] sm:$0xff] }
  0x2e   : > { %v364_v5 = vadd.f32 %v1372_v18, %v346_v54  ;;  %v299_v6 = vmul.f32 %v1435_v50, %v1339_v4  ;;  %v333_v11 = vmul.f32 %v1438_v51, %v1355_v10  ;;  %v282_v12 = vmul.f32 %v1328_v0, %v1441_v52  ;;  %v1489_v37 = vld [vmem:[%s1326_s19 + $0x148] sm:$0xff]  ;;  %v1499_v45 = vld [vmem:[%s1326_s19 + $0xd0] sm:$0xff]  ;;  %v1512_v54 = vld [vmem:[%s1326_s19 + $0x58] sm:$0xff] }
  0x2f   : > { %393 = vst [vmem:[%s1458_s26] sm:$0xff] %v377_v53  ;;  %394 = vst [vmem:[%s1458_s26 + $0x8] sm:$0xff] %v378_v58  ;;  %v379_v17 = vmax.f32 %v363_v59, 0.0  ;;  %v365_v19 = vadd.f32 %v1372_v18, %v347_v60  ;;  %v348_v23 = vadd.f32 %v332_v55, %v314_v61  ;;  %v300_v24 = vmul.f32 %v1448_v57, %v1339_v4  ;;  %v1509_v53 = vld [vmem:[%s1326_s19 + $0x150] sm:$0xff]  ;;  %v1518_v60 = vld [vmem:[%s1326_s19 + $0xd8] sm:$0xff] }
  0x30   : > { %v380_v31 = vmax.f32 %v364_v5, 0.0  ;;  %v315_v32 = vadd.f32 %v299_v6, %v281_v56  ;;  %v334_v33 = vmul.f32 %v1452_v62, %v1355_v10  ;;  %v283_v36 = vmul.f32 %v1328_v0, %v1455_v63 }
  0x31   : > { %395 = vst [vmem:[%s1458_s26 + $0x10] sm:$0xff] %v379_v17  ;;  %v381_v38 = vmax.f32 %v365_v19, 0.0  ;;  %v366_v39 = vadd.f32 %v1372_v18, %v348_v23  ;;  %v316_v42 = vadd.f32 %v300_v24, %v282_v12  ;;  %v301_v43 = vmul.f32 %v1469_v16, %v1339_v4  ;;  %v1526_v12 = vld [vmem:[%s1326_s19 + $0x158] sm:$0xff]  ;;  %v1529_v17 = vld [vmem:[%s1326_s19 + $0x60] sm:$0xff] }
  0x32   : > { %396 = vst [vmem:[%s1458_s26 + $0x18] sm:$0xff] %v380_v31  ;;  %v349_v46 = vadd.f32 %v333_v11, %v315_v32  ;;  %v335_v47 = vmul.f32 %v1476_v25, %v1355_v10  ;;  %v284_v48 = vmul.f32 %v1328_v0, %v1479_v26  ;;  %v302_v49 = vmul.f32 %v1482_v30, %v1339_v4  ;;  %v1538_v32 = vld [vmem:[%s1326_s19 + $0xe0] sm:$0xff] }
  0x33   : > { %397 = vst [vmem:[%s1458_s26 + $0x20] sm:$0xff] %v381_v38  ;;  %v382_v55 = vmax.f32 %v366_v39, 0.0  ;;  %v350_v56 = vadd.f32 %v334_v33, %v316_v42  ;;  %v317_v58 = vadd.f32 %v301_v43, %v283_v36  ;;  %v336_v59 = vmul.f32 %v1489_v37, %v1355_v10  ;;  %2148 = vst [vmem:[#allocation17_spill] sm:$0xff] %v1538_v32  ;;  %v1545_v42 = vld [vmem:[%s1326_s19 + $0x160] sm:$0xff]  ;;  %v1548_v43 = vld [vmem:[%s1326_s19 + $0x68] sm:$0xff] }
  0x34   : > { %v367_v61 = vadd.f32 %v1372_v18, %v349_v46  ;;  %v318_v5 = vadd.f32 %v302_v49, %v284_v48  ;;  %v285_v6 = vmul.f32 %v1328_v0, %v1496_v44  ;;  %v303_v11 = vmul.f32 %v1499_v45, %v1339_v4  ;;  %2149 = vst [vmem:[#allocation18_spill] sm:$0xff] %v1545_v42  ;;  %v1551_v46 = vld [vmem:[%s1326_s19 + $0xe8] sm:$0xff] }
  0x35   : > { %398 = vst [vmem:[%s1458_s26 + $0x28] sm:$0xff] %v382_v55  ;;  %v368_v19 = vadd.f32 %v1372_v18, %v350_v56  ;;  %v351_v23 = vadd.f32 %v335_v47, %v317_v58  ;;  %v337_v24 = vmul.f32 %v1509_v53, %v1355_v10  ;;  %v286_v31 = vmul.f32 %v1328_v0, %v1512_v54 }
  0x36   : > { %v383_v33 = vmax.f32 %v367_v61, 0.0  ;;  %v352_v36 = vadd.f32 %v336_v59, %v318_v5  ;;  %v319_v38 = vadd.f32 %v303_v11, %v285_v6  ;;  %v304_v39 = vmul.f32 %v1518_v60, %v1339_v4  ;;  %2150 = vst [vmem:[#allocation19_spill] sm:$0xff] %v1548_v43  ;;  %2151 = vst [vmem:[#allocation20_spill] sm:$0xff] %v1551_v46  ;;  %v1567_v5 = vld [vmem:[%s1326_s19 + $0x168] sm:$0xff]  ;;  %v1570_v6 = vld [vmem:[%s1326_s19 + $0x70] sm:$0xff] }
  0x37   : > { %v384_v47 = vmax.f32 %v368_v19, 0.0  ;;  %v369_v48 = vadd.f32 %v1372_v18, %v351_v23  ;;  %v338_v49 = vmul.f32 %v1526_v12, %v1355_v10  ;;  %v287_v55 = vmul.f32 %v1328_v0, %v1529_v17  ;;  %v1573_v11 = vld [vmem:[%s1326_s19 + $0xf0] sm:$0xff] }
  0x38   : > { %399 = vst [vmem:[%s1458_s26 + $0x30] sm:$0xff] %v383_v33  ;;  %v370_v56 = vadd.f32 %v1372_v18, %v352_v36  ;;  %v353_v58 = vadd.f32 %v337_v24, %v319_v38  ;;  %v320_v59 = vadd.f32 %v304_v39, %v286_v31  ;;  %v305_v61 = vmul.f32 %v1538_v32, %v1339_v4  ;;  %v1585_v33 = vld [vmem:[%s1326_s19 + $0x170] sm:$0xff] }
  0x39   : > { %2152 = vst [vmem:[#allocation21_spill] sm:$0xff] %v1573_v11  ;;  %400 = vst [vmem:[%s1458_s26 + $0x38] sm:$0xff] %v384_v47  ;;  %v385_v19 = vmax.f32 %v369_v48, 0.0  ;;  %v339_v23 = vmul.f32 %v1545_v42, %v1355_v10  ;;  %v288_v24 = vmul.f32 %v1328_v0, %v1548_v43  ;;  %v306_v31 = vmul.f32 %v1551_v46, %v1339_v4  ;;  %v1589_v47 = vld [vmem:[%s1326_s19 + $0x78] sm:$0xff] }
  0x3a   : > { %v386_v36 = vmax.f32 %v370_v56, 0.0  ;;  %v371_v38 = vadd.f32 %v1372_v18, %v353_v58  ;;  %v354_v39 = vadd.f32 %v338_v49, %v320_v59  ;;  %v321_v32 = vadd.f32 %v305_v61, %v287_v55  ;;  %v1592_v48 = vld [vmem:[%s1326_s19 + $0xf8] sm:$0xff] }
  0x3b   : > { %401 = vst [vmem:[%s1458_s26 + $0x40] sm:$0xff] %v385_v19  ;;  %v322_v42 = vadd.f32 %v306_v31, %v288_v24  ;;  %v340_v43 = vmul.f32 %v1567_v5, %v1355_v10  ;;  %v289_v46 = vmul.f32 %v1328_v0, %v1570_v6  ;;  %v307_v56 = vmul.f32 %v1573_v11, %v1339_v4  ;;  %v1602_v58 = vld [vmem:[%s1326_s19 + $0x178] sm:$0xff]  ;;  %s836_s19 = sshll.u32 %s1458_s26, 4  ;;  %s2065_s19 = int_to_ptr.vmem [resolvable:$true] %s836_s19 }
  0x3c   : > { %402 = vst [vmem:[%s1458_s26 + $0x48] sm:$0xff] %v386_v36  ;;  %v387_v49 = vmax.f32 %v371_v38, 0.0  ;;  %v372_v55 = vadd.f32 %v1372_v18, %v354_v39  ;;  %v355_v59 = vadd.f32 %v339_v23, %v321_v32  ;;  %v341_v61 = vmul.f32 %v1585_v33, %v1355_v10 }
  0x3d   : > { %v356_v19 = vadd.f32 %v340_v43, %v322_v42  ;;  %v323_v24 = vadd.f32 %v307_v56, %v289_v46  ;;  %v290_v31 = vmul.f32 %v1328_v0, %v1589_v47  ;;  %v308_v11 = vmul.f32 %v1592_v48, %v1339_v4 }
  0x3e   : > { %403 = vst [vmem:[%s1458_s26 + $0x50] sm:$0xff] %v387_v49  ;;  %v388_v36 = vmax.f32 %v372_v55, 0.0  ;;  %v373_v38 = vadd.f32 %v1372_v18, %v355_v59  ;;  %v342_v32 = vmul.f32 %v1602_v58, %v1355_v10  ;;  %v1617_v23 = vstv %s1540_s27 }
  0x3f   : > { %v374_v42 = vadd.f32 %v1372_v18, %v356_v19  ;;  %v357_v43 = vadd.f32 %v341_v61, %v323_v24  ;;  %v324_v46 = vadd.f32 %v308_v11, %v290_v31  ;;  %v411_v0 = vmul.f32 %v1617_v23, %v1331_v1 }
  0x40   : > { %404 = vst [vmem:[%s1458_s26 + $0x58] sm:$0xff] %v388_v36  ;;  %v389_v4 = vmax.f32 %v373_v38, 0.0  ;;  %v1624_v39 = vstv %s1553_s28  ;;  %v1627_v56 = vstv %s1560_s29  ;;  %v1630_v49 = vstv %s1575_s30  ;;  %s2063_s28 = scalar_lea.hbm %s2119_s3, %s1047_s18  ;;  %s1149_s29 = scalar_lea.vmem %s2065_s19, 8192 }
  0x41   : > { %v390_v55 = vmax.f32 %v374_v42, 0.0  ;;  %v375_v10 = vadd.f32 %v1372_v18, %v357_v43  ;;  %v358_v59 = vadd.f32 %v342_v32, %v324_v46  ;;  %v429_v11 = vmul.f32 %v1334_v2, %v1624_v39  ;;  %p1150_p1 = scmp.ne.s32.totalorder %s2065_s19, %s1149_s29  ;;  %s1237_s30 = smov [#allocation7]  }
  0x42   : > { %405 = vst [vmem:[%s1458_s26 + $0x60] sm:$0xff] %v389_v4  ;;  %v463_v61 = vmul.f32 %v1337_v3, %v1627_v56  ;;  %v412_v19 = vmul.f32 %v1617_v23, %v1346_v7  ;;  %v430_v24 = vmul.f32 %v1349_v8, %v1624_v39  ;;  %v464_v31 = vmul.f32 %v1352_v9, %v1627_v56 }
  0x43   : > { %406 = vst [vmem:[%s1458_s26 + $0x68] sm:$0xff] %v390_v55  ;;  %v391_v36 = vmax.f32 %v375_v10, 0.0  ;;  %v376_v38 = vadd.f32 %v1372_v18, %v358_v59  ;;  %v445_v32 = vadd.f32 %v429_v11, %v411_v0  ;;  %v413_v42 = vmul.f32 %v1617_v23, %v1362_v13  ;;  %p1151_p2 = pnand %p1150_p1, %p1300_p4 }
  0x44   : > { %v446_v43 = vadd.f32 %v430_v24, %v412_v19  ;;  %v431_v46 = vmul.f32 %v1365_v14, %v1624_v39  ;;  %v465_v4 = vmul.f32 %v1368_v15, %v1627_v56  ;;  %v414_v8 = vmul.f32 %v1617_v23, %v1377_v20 }
  0x45   : > { %407 = vst [vmem:[%s1458_s26 + $0x70] sm:$0xff] %v391_v36  ;;  %v392_v55 = vmax.f32 %v376_v38, 0.0  ;;  %v479_v10 = vadd.f32 %v463_v61, %v445_v32  ;;  %v432_v18 = vmul.f32 %v1380_v21, %v1624_v39  ;;  %v466_v0 = vmul.f32 %v1383_v22, %v1627_v56  ;;  %p1152_p3 = pneg %p1151_p2 }
  0x46   : > { %v480_v59 = vadd.f32 %v464_v31, %v446_v43  ;;  %v447_v11 = vadd.f32 %v431_v46, %v413_v42  ;;  %v415_v19 = vmul.f32 %v1617_v23, %v1392_v27  ;;  %v433_v24 = vmul.f32 %v1395_v28, %v1624_v39 }
  0x47   : > { %408 = vst [vmem:[%s1458_s26 + $0x78] sm:$0xff] %v392_v55  ;;  %v497_v20 = vadd.f32 %v1630_v49, %v479_v10  ;;  %v448_v36 = vadd.f32 %v432_v18, %v414_v8  ;;  %v467_v61 = vmul.f32 %v1398_v29, %v1627_v56  ;;  %v416_v38 = vmul.f32 %v1617_v23, %v1411_v34 }
  0x48   : > { %v498_v31 = vadd.f32 %v1630_v49, %v480_v59  ;;  %v481_v32 = vadd.f32 %v465_v4, %v447_v11  ;;  %v449_v42 = vadd.f32 %v433_v24, %v415_v19  ;;  %v434_v43 = vmul.f32 %v1414_v35, %v1624_v39 }
  0x49   : > { %v513_v46 = vmax.f32 %v497_v20, 0.0  ;;  %v482_v55 = vadd.f32 %v466_v0, %v448_v36  ;;  %v468_v10 = vmul.f32 %v1421_v40, %v1627_v56  ;;  %v417_v8 = vmul.f32 %v1617_v23, %v1424_v41 }
  0x4a   : > { %v514_v18 = vmax.f32 %v498_v31, 0.0  ;;  %v499_v29 = vadd.f32 %v1630_v49, %v481_v32  ;;  %v483_v34 = vadd.f32 %v467_v61, %v449_v42  ;;  %v450_v59 = vadd.f32 %v434_v43, %v416_v38 }
  0x4b   : > { %986 = vst [vmem:[%s1458_s26 + $0x80] sm:$0xff] %v513_v46  ;;  %v500_v4 = vadd.f32 %v1630_v49, %v482_v55  ;;  %v435_v11 = vmul.f32 %v1435_v50, %v1624_v39  ;;  %v469_v20 = vmul.f32 %v1438_v51, %v1627_v56  ;;  %v418_v0 = vmul.f32 %v1617_v23, %v1441_v52 }
  0x4c   : > { %987 = vst [vmem:[%s1458_s26 + $0x88] sm:$0xff] %v514_v18  ;;  %v515_v19 = vmax.f32 %v499_v29, 0.0  ;;  %v501_v24 = vadd.f32 %v1630_v49, %v483_v34  ;;  %v484_v36 = vadd.f32 %v468_v10, %v450_v59  ;;  %v436_v61 = vmul.f32 %v1448_v57, %v1624_v39 }
  0x4d   : > { %v516_v38 = vmax.f32 %v500_v4, 0.0  ;;  %v451_v31 = vadd.f32 %v435_v11, %v417_v8  ;;  %v470_v32 = vmul.f32 %v1452_v62, %v1627_v56  ;;  %v419_v42 = vmul.f32 %v1617_v23, %v1455_v63 }
  0x4e   : > { %988 = vst [vmem:[%s1458_s26 + $0x90] sm:$0xff] %v515_v19  ;;  %v517_v43 = vmax.f32 %v501_v24, 0.0  ;;  %v502_v46 = vadd.f32 %v1630_v49, %v484_v36  ;;  %v452_v29 = vadd.f32 %v436_v61, %v418_v0  ;;  %v437_v34 = vmul.f32 %v1469_v16, %v1624_v39 }
  0x4f   : > { %989 = vst [vmem:[%s1458_s26 + $0x98] sm:$0xff] %v516_v38  ;;  %v485_v55 = vadd.f32 %v469_v20, %v451_v31  ;;  %v471_v10 = vmul.f32 %v1476_v25, %v1627_v56  ;;  %v420_v8 = vmul.f32 %v1617_v23, %v1479_v26  ;;  %v438_v18 = vmul.f32 %v1482_v30, %v1624_v39 }
  0x50   : > { %990 = vst [vmem:[%s1458_s26 + $0xa0] sm:$0xff] %v517_v43  ;;  %v518_v59 = vmax.f32 %v502_v46, 0.0  ;;  %v486_v4 = vadd.f32 %v470_v32, %v452_v29  ;;  %v453_v11 = vadd.f32 %v437_v34, %v419_v42  ;;  %v472_v0 = vmul.f32 %v1489_v37, %v1627_v56 }
  0x51   : > { %v503_v19 = vadd.f32 %v1630_v49, %v485_v55  ;;  %v454_v24 = vadd.f32 %v438_v18, %v420_v8  ;;  %v421_v20 = vmul.f32 %v1617_v23, %v1496_v44  ;;  %v439_v36 = vmul.f32 %v1499_v45, %v1624_v39 }
  0x52   : > { %991 = vst [vmem:[%s1458_s26 + $0xa8] sm:$0xff] %v518_v59  ;;  %v504_v61 = vadd.f32 %v1630_v49, %v486_v4  ;;  %v487_v38 = vadd.f32 %v471_v10, %v453_v11  ;;  %v473_v31 = vmul.f32 %v1509_v53, %v1627_v56  ;;  %v422_v32 = vmul.f32 %v1617_v23, %v1512_v54  ;;  %v2153_v11 = vld [vmem:[#allocation17_spill] sm:$0xff] }
  0x53   : > { %v519_v42 = vmax.f32 %v503_v19, 0.0  ;;  %v488_v43 = vadd.f32 %v472_v0, %v454_v24  ;;  %v455_v46 = vadd.f32 %v439_v36, %v421_v20  ;;  %v440_v29 = vmul.f32 %v1518_v60, %v1624_v39  ;;  %v2154_v24 = vld [vmem:[#allocation18_spill] sm:$0xff]  ;;  %v2155_v36 = vld [vmem:[#allocation19_spill] sm:$0xff] }
  0x54   : > { %v520_v34 = vmax.f32 %v504_v61, 0.0  ;;  %v505_v55 = vadd.f32 %v1630_v49, %v487_v38  ;;  %v474_v10 = vmul.f32 %v1526_v12, %v1627_v56  ;;  %v423_v8 = vmul.f32 %v1617_v23, %v1529_v17  ;;  %v2156_v38 = vld [vmem:[#allocation20_spill] sm:$0xff] }
  0x55   : > { %992 = vst [vmem:[%s1458_s26 + $0xb0] sm:$0xff] %v519_v42  ;;  %v506_v18 = vadd.f32 %v1630_v49, %v488_v43  ;;  %v489_v59 = vadd.f32 %v473_v31, %v455_v46  ;;  %v456_v4 = vadd.f32 %v440_v29, %v422_v32  ;;  %v441_v0 = vmul.f32 %v2153_v11, %v1624_v39 }
  0x56   : > { %993 = vst [vmem:[%s1458_s26 + $0xb8] sm:$0xff] %v520_v34  ;;  %v521_v19 = vmax.f32 %v505_v55, 0.0  ;;  %v475_v20 = vmul.f32 %v2154_v24, %v1627_v56  ;;  %v424_v61 = vmul.f32 %v1617_v23, %v2155_v36  ;;  %v442_v42 = vmul.f32 %v2156_v38, %v1624_v39  ;;  %v2157_v36 = vld [vmem:[#allocation21_spill] sm:$0xff] }
  0x57   : > { %v522_v43 = vmax.f32 %v506_v18, 0.0  ;;  %v507_v31 = vadd.f32 %v1630_v49, %v489_v59  ;;  %v490_v32 = vadd.f32 %v474_v10, %v456_v4  ;;  %v457_v46 = vadd.f32 %v441_v0, %v423_v8 }
  0x58   : > { %994 = vst [vmem:[%s1458_s26 + $0xc0] sm:$0xff] %v521_v19  ;;  %v458_v29 = vadd.f32 %v442_v42, %v424_v61  ;;  %v476_v34 = vmul.f32 %v1567_v5, %v1627_v56  ;;  %v425_v55 = vmul.f32 %v1617_v23, %v1570_v6  ;;  %v443_v24 = vmul.f32 %v2157_v36, %v1624_v39 }
  0x59   : > { %995 = vst [vmem:[%s1458_s26 + $0xc8] sm:$0xff] %v522_v43  ;;  %v523_v38 = vmax.f32 %v507_v31, 0.0  ;;  %v508_v18 = vadd.f32 %v1630_v49, %v490_v32  ;;  %v491_v10 = vadd.f32 %v475_v20, %v457_v46  ;;  %v477_v8 = vmul.f32 %v1585_v33, %v1627_v56 }
  0x5a   : > { %v492_v59 = vadd.f32 %v476_v34, %v458_v29  ;;  %v459_v4 = vadd.f32 %v443_v24, %v425_v55  ;;  %v426_v0 = vmul.f32 %v1617_v23, %v1589_v47  ;;  %v444_v19 = vmul.f32 %v1592_v48, %v1624_v39 }
  0x5b   : > { %996 = vst [vmem:[%s1458_s26 + $0xd0] sm:$0xff] %v523_v38  ;;  %v524_v61 = vmax.f32 %v508_v18, 0.0  ;;  %v509_v42 = vadd.f32 %v1630_v49, %v491_v10  ;;  %v478_v20 = vmul.f32 %v1602_v58, %v1627_v56  ;;  %v1765_v43 = vstv %s1718_s4  ;;  %s1153_s4 = sshll.u32 %s1237_s30, 4  ;;  %s1154_s4 = int_to_ptr.vmem [resolvable:$false] %s1153_s4 }
  0x5c   : > { %v510_v31 = vadd.f32 %v1630_v49, %v492_v59  ;;  %v493_v24 = vadd.f32 %v477_v8, %v459_v4  ;;  %v460_v32 = vadd.f32 %v444_v19, %v426_v0  ;;  %v548_v23 = vmul.f32 %v1765_v43, %v1331_v1  ;;  %v2158_v59 = vld [vmem:[#allocation11_spill] sm:$0xff]  ;;  %p1156_p5 = scmp.lt.s32.totalorder %s2065_s19, %s1154_s4 }
  0x5d   : > { %997 = vst [vmem:[%s1458_s26 + $0xd8] sm:$0xff] %v524_v61  ;;  %v525_v39 = vmax.f32 %v509_v42, 0.0  ;;  %v1772_v38 = vstv %s1722_s5  ;;  %v1775_v46 = vstv %s1729_s6  ;;  %v1778_v29 = vstv %s1735_s7  ;;  %s1155_s5 = scalar_lea.vmem %s1154_s4, 16384 }
  0x5e   : > { %v526_v34 = vmax.f32 %v510_v31, 0.0  ;;  %v511_v56 = vadd.f32 %v1630_v49, %v493_v24  ;;  %v494_v55 = vadd.f32 %v478_v20, %v460_v32  ;;  %v566_v18 = vmul.f32 %v1334_v2, %v1772_v38  ;;  %p1157_p6 = scmp.lt.s32.totalorder %s1155_s5, %s1149_s29 }
  0x5f   : > { %998 = vst [vmem:[%s1458_s26 + $0xe0] sm:$0xff] %v525_v39  ;;  %v600_v10 = vmul.f32 %v1337_v3, %v1775_v46  ;;  %v549_v8 = vmul.f32 %v1765_v43, %v1346_v7  ;;  %v567_v4 = vmul.f32 %v2158_v59, %v1772_v38  ;;  %v601_v0 = vmul.f32 %v1352_v9, %v1775_v46  ;;  %v2159_v39 = vld [vmem:[#allocation12_spill] sm:$0xff] }
  0x60   : > { %999 = vst [vmem:[%s1458_s26 + $0xe8] sm:$0xff] %v526_v34  ;;  %v527_v19 = vmax.f32 %v511_v56, 0.0  ;;  %v512_v61 = vadd.f32 %v1630_v49, %v494_v55  ;;  %v582_v42 = vadd.f32 %v566_v18, %v548_v23  ;;  %v550_v20 = vmul.f32 %v1765_v43, %v1362_v13  ;;  %p1158_p7 = por %p1157_p6, %p1156_p5 }
  0x61   : > { %v583_v31 = vadd.f32 %v567_v4, %v549_v8  ;;  %v568_v24 = vmul.f32 %v1365_v14, %v1772_v38  ;;  %v602_v32 = vmul.f32 %v1368_v15, %v1775_v46  ;;  %v551_v59 = vmul.f32 %v1765_v43, %v2159_v39 }
  0x62   : > { %1000 = vst [vmem:[%s1458_s26 + $0xf0] sm:$0xff] %v527_v19  ;;  %v528_v34 = vmax.f32 %v512_v61, 0.0  ;;  %v616_v56 = vadd.f32 %v600_v10, %v582_v42  ;;  %v569_v49 = vmul.f32 %v1380_v21, %v1772_v38  ;;  %v603_v23 = vmul.f32 %v1383_v22, %v1775_v46  ;;  %v2160_v10 = vld [vmem:[#allocation15_spill] sm:$0xff]  ;;  %v2161_v42 = vld [vmem:[#allocation16_spill] sm:$0xff]  ;;  %p1159_p9 = pnand %p1158_p7, %p1152_p3 }
  0x63   : > { %v617_v55 = vadd.f32 %v601_v0, %v583_v31  ;;  %v584_v18 = vadd.f32 %v568_v24, %v550_v20  ;;  %v552_v8 = vmul.f32 %v1765_v43, %v1392_v27  ;;  %v570_v4 = vmul.f32 %v1395_v28, %v1772_v38 }
  0x64   : > { %1001 = vst [vmem:[%s1458_s26 + $0xf8] sm:$0xff] %v528_v34  ;;  %v634_v39 = vadd.f32 %v1778_v29, %v616_v56  ;;  %v585_v19 = vadd.f32 %v569_v49, %v551_v59  ;;  %v604_v61 = vmul.f32 %v2160_v10, %v1775_v46  ;;  %v553_v21 = vmul.f32 %v1765_v43, %v2161_v42 }
  0x65   : > { %v635_v0 = vadd.f32 %v1778_v29, %v617_v55  ;;  %v618_v20 = vadd.f32 %v602_v32, %v584_v18  ;;  %v586_v31 = vadd.f32 %v570_v4, %v552_v8  ;;  %v571_v24 = vmul.f32 %v1414_v35, %v1772_v38 }
  0x66   : > { %v650_v28 = vmax.f32 %v634_v39, 0.0  ;;  %v619_v34 = vadd.f32 %v603_v23, %v585_v19  ;;  %v605_v56 = vmul.f32 %v1421_v40, %v1775_v46  ;;  %v554_v59 = vmul.f32 %v1765_v43, %v1424_v41 }
  0x67   : > { %v651_v49 = vmax.f32 %v635_v0, 0.0  ;;  %v636_v10 = vadd.f32 %v1778_v29, %v618_v20  ;;  %v620_v42 = vadd.f32 %v604_v61, %v586_v31  ;;  %v587_v55 = vadd.f32 %v571_v24, %v553_v21 }
  0x68   : > { %1006 = vst [vmem:[%s1458_s26 + $0x100] sm:$0xff] %v650_v28  ;;  %v637_v32 = vadd.f32 %v1778_v29, %v619_v34  ;;  %v572_v18 = vmul.f32 %v1435_v50, %v1772_v38  ;;  %v606_v39 = vmul.f32 %v1438_v51, %v1775_v46  ;;  %v555_v23 = vmul.f32 %v1765_v43, %v1441_v52 }
  0x69   : > { %1007 = vst [vmem:[%s1458_s26 + $0x108] sm:$0xff] %v651_v49  ;;  %v652_v8 = vmax.f32 %v636_v10, 0.0  ;;  %v638_v4 = vadd.f32 %v1778_v29, %v620_v42  ;;  %v621_v19 = vadd.f32 %v605_v56, %v587_v55  ;;  %v573_v21 = vmul.f32 %v1448_v57, %v1772_v38 }
  0x6a   : > { %v653_v28 = vmax.f32 %v637_v32, 0.0  ;;  %v588_v61 = vadd.f32 %v572_v18, %v554_v59  ;;  %v607_v0 = vmul.f32 %v1452_v62, %v1775_v46  ;;  %v556_v20 = vmul.f32 %v1765_v43, %v1455_v63 }
  0x6b   : > { %1008 = vst [vmem:[%s1458_s26 + $0x110] sm:$0xff] %v652_v8  ;;  %v654_v31 = vmax.f32 %v638_v4, 0.0  ;;  %v639_v24 = vadd.f32 %v1778_v29, %v621_v19  ;;  %v589_v10 = vadd.f32 %v573_v21, %v555_v23  ;;  %v574_v42 = vmul.f32 %v1469_v16, %v1772_v38 }
  0x6c   : > { %1009 = vst [vmem:[%s1458_s26 + $0x118] sm:$0xff] %v653_v28  ;;  %v622_v34 = vadd.f32 %v606_v39, %v588_v61  ;;  %v608_v56 = vmul.f32 %v1476_v25, %v1775_v46  ;;  %v557_v59 = vmul.f32 %v1765_v43, %v1479_v26  ;;  %v575_v49 = vmul.f32 %v1482_v30, %v1772_v38 }
  0x6d   : > { %1010 = vst [vmem:[%s1458_s26 + $0x120] sm:$0xff] %v654_v31  ;;  %v655_v55 = vmax.f32 %v639_v24, 0.0  ;;  %v623_v32 = vadd.f32 %v607_v0, %v589_v10  ;;  %v590_v18 = vadd.f32 %v574_v42, %v556_v20  ;;  %v609_v23 = vmul.f32 %v1489_v37, %v1775_v46 }
  0x6e   : > { %v640_v8 = vadd.f32 %v1778_v29, %v622_v34  ;;  %v591_v4 = vadd.f32 %v575_v49, %v557_v59  ;;  %v558_v39 = vmul.f32 %v1765_v43, %v1496_v44  ;;  %v576_v19 = vmul.f32 %v1499_v45, %v1772_v38 }
  0x6f   : > { %1011 = vst [vmem:[%s1458_s26 + $0x128] sm:$0xff] %v655_v55  ;;  %v641_v21 = vadd.f32 %v1778_v29, %v623_v32  ;;  %v624_v28 = vadd.f32 %v608_v56, %v590_v18  ;;  %v610_v61 = vmul.f32 %v1509_v53, %v1775_v46  ;;  %v559_v0 = vmul.f32 %v1765_v43, %v1512_v54 }
  0x70   : > { %v656_v20 = vmax.f32 %v640_v8, 0.0  ;;  %v625_v31 = vadd.f32 %v609_v23, %v591_v4  ;;  %v592_v24 = vadd.f32 %v576_v19, %v558_v39  ;;  %v577_v10 = vmul.f32 %v1518_v60, %v1772_v38  ;;  %v2162_v8 = vld [vmem:[#allocation18_spill] sm:$0xff]  ;;  %v2163_v39 = vld [vmem:[#allocation19_spill] sm:$0xff] }
  0x71   : > { %v657_v42 = vmax.f32 %v641_v21, 0.0  ;;  %v642_v34 = vadd.f32 %v1778_v29, %v624_v28  ;;  %v611_v56 = vmul.f32 %v1526_v12, %v1775_v46  ;;  %v560_v59 = vmul.f32 %v1765_v43, %v1529_v17  ;;  %v2164_v21 = vld [vmem:[#allocation20_spill] sm:$0xff] }
  0x72   : > { %1012 = vst [vmem:[%s1458_s26 + $0x130] sm:$0xff] %v656_v20  ;;  %v643_v49 = vadd.f32 %v1778_v29, %v625_v31  ;;  %v626_v55 = vadd.f32 %v610_v61, %v592_v24  ;;  %v593_v32 = vadd.f32 %v577_v10, %v559_v0  ;;  %v578_v18 = vmul.f32 %v2153_v11, %v1772_v38 }
  0x73   : > { %1013 = vst [vmem:[%s1458_s26 + $0x138] sm:$0xff] %v657_v42  ;;  %v658_v23 = vmax.f32 %v642_v34, 0.0  ;;  %v612_v4 = vmul.f32 %v2162_v8, %v1775_v46  ;;  %v561_v19 = vmul.f32 %v1765_v43, %v2163_v39  ;;  %v579_v28 = vmul.f32 %v2164_v21, %v1772_v38 }
  0x74   : > { %v659_v20 = vmax.f32 %v643_v49, 0.0  ;;  %v644_v61 = vadd.f32 %v1778_v29, %v626_v55  ;;  %v627_v0 = vadd.f32 %v611_v56, %v593_v32  ;;  %v594_v31 = vadd.f32 %v578_v18, %v560_v59 }
  0x75   : > { %1014 = vst [vmem:[%s1458_s26 + $0x140] sm:$0xff] %v658_v23  ;;  %v595_v24 = vadd.f32 %v579_v28, %v561_v19  ;;  %v613_v10 = vmul.f32 %v1567_v5, %v1775_v46  ;;  %v562_v42 = vmul.f32 %v1765_v43, %v1570_v6  ;;  %v580_v34 = vmul.f32 %v2157_v36, %v1772_v38 }
  0x76   : > { %1015 = vst [vmem:[%s1458_s26 + $0x148] sm:$0xff] %v659_v20  ;;  %v660_v21 = vmax.f32 %v644_v61, 0.0  ;;  %v645_v49 = vadd.f32 %v1778_v29, %v627_v0  ;;  %v628_v56 = vadd.f32 %v612_v4, %v594_v31  ;;  %v614_v59 = vmul.f32 %v1585_v33, %v1775_v46 }
  0x77   : > { %v629_v55 = vadd.f32 %v613_v10, %v595_v24  ;;  %v596_v32 = vadd.f32 %v580_v34, %v562_v42  ;;  %v563_v18 = vmul.f32 %v1765_v43, %v1589_v47  ;;  %v581_v23 = vmul.f32 %v1592_v48, %v1772_v38 }
  0x78   : > { %1016 = vst [vmem:[%s1458_s26 + $0x150] sm:$0xff] %v660_v21  ;;  %v661_v19 = vmax.f32 %v645_v49, 0.0  ;;  %v646_v28 = vadd.f32 %v1778_v29, %v628_v56  ;;  %v615_v4 = vmul.f32 %v1602_v58, %v1775_v46  ;;  %v1913_v20 = vstv %s1866_s8 }
  0x79   : > { %v647_v61 = vadd.f32 %v1778_v29, %v629_v55  ;;  %v630_v0 = vadd.f32 %v614_v59, %v596_v32  ;;  %v597_v31 = vadd.f32 %v581_v23, %v563_v18  ;;  %v685_v43 = vmul.f32 %v1913_v20, %v1331_v1  ;;  %v2165_v59 = vld [vmem:[#allocation11_spill] sm:$0xff] }
  0x7a   : > { %1017 = vst [vmem:[%s1458_s26 + $0x158] sm:$0xff] %v661_v19  ;;  %v662_v38 = vmax.f32 %v646_v28, 0.0  ;;  %v1920_v21 = vstv %s1870_s9  ;;  %v1923_v24 = vstv %s1877_s10  ;;  %v1926_v10 = vstv %s1883_s11 }
  0x7b   : > { %v663_v42 = vmax.f32 %v647_v61, 0.0  ;;  %v648_v46 = vadd.f32 %v1778_v29, %v630_v0  ;;  %v631_v34 = vadd.f32 %v615_v4, %v597_v31  ;;  %v703_v49 = vmul.f32 %v1334_v2, %v1920_v21  ;;  %v2166_v4 = vld [vmem:[#allocation12_spill] sm:$0xff] }
  0x7c   : > { %1018 = vst [vmem:[%s1458_s26 + $0x160] sm:$0xff] %v662_v38  ;;  %v737_v1 = vmul.f32 %v1337_v3, %v1923_v24  ;;  %v686_v56 = vmul.f32 %v1913_v20, %v1346_v7  ;;  %v704_v55 = vmul.f32 %v2165_v59, %v1920_v21  ;;  %v738_v32 = vmul.f32 %v1352_v9, %v1923_v24 }
  0x7d   : > { %1019 = vst [vmem:[%s1458_s26 + $0x168] sm:$0xff] %v663_v42  ;;  %v664_v18 = vmax.f32 %v648_v46, 0.0  ;;  %v649_v23 = vadd.f32 %v1778_v29, %v631_v34  ;;  %v719_v19 = vadd.f32 %v703_v49, %v685_v43  ;;  %v687_v2 = vmul.f32 %v1913_v20, %v1362_v13  ;;  %v2167_v29 = vld [vmem:[#allocation13_spill] sm:$0xff]  ;;  %v2168_v42 = vld [vmem:[#allocation14_spill] sm:$0xff]  ;;  %v2169_v49 = vld [vmem:[#allocation15_spill] sm:$0xff] }
  0x7e   : > { %v720_v28 = vadd.f32 %v704_v55, %v686_v56  ;;  %v705_v3 = vmul.f32 %v1365_v14, %v1920_v21  ;;  %v739_v7 = vmul.f32 %v1368_v15, %v1923_v24  ;;  %v688_v61 = vmul.f32 %v1913_v20, %v2166_v4  ;;  %v2170_v56 = vld [vmem:[#allocation16_spill] sm:$0xff] }
  0x7f   : > { %1020 = vst [vmem:[%s1458_s26 + $0x170] sm:$0xff] %v664_v18  ;;  %v665_v9 = vmax.f32 %v649_v23, 0.0  ;;  %v753_v0 = vadd.f32 %v737_v1, %v719_v19  ;;  %v706_v31 = vmul.f32 %v2167_v29, %v1920_v21  ;;  %v740_v43 = vmul.f32 %v1383_v22, %v1923_v24 }
  0x80   : > { %v754_v13 = vadd.f32 %v738_v32, %v720_v28  ;;  %v721_v38 = vadd.f32 %v705_v3, %v687_v2  ;;  %v689_v14 = vmul.f32 %v1913_v20, %v1392_v27  ;;  %v707_v15 = vmul.f32 %v2168_v42, %v1920_v21 }
  0x81   : > { %1021 = vst [vmem:[%s1458_s26 + $0x178] sm:$0xff] %v665_v9  ;;  %v771_v46 = vadd.f32 %v1926_v10, %v753_v0  ;;  %v722_v34 = vadd.f32 %v706_v31, %v688_v61  ;;  %v741_v1 = vmul.f32 %v2169_v49, %v1923_v24  ;;  %v690_v59 = vmul.f32 %v1913_v20, %v2170_v56 }
  0x82   : > { %v772_v22 = vadd.f32 %v1926_v10, %v754_v13  ;;  %v755_v55 = vadd.f32 %v739_v7, %v721_v38  ;;  %v723_v32 = vadd.f32 %v707_v15, %v689_v14  ;;  %v708_v27 = vmul.f32 %v1414_v35, %v1920_v21 }
  0x83   : > { %v787_v18 = vmax.f32 %v771_v46, 0.0  ;;  %v756_v23 = vadd.f32 %v740_v43, %v722_v34  ;;  %v742_v19 = vmul.f32 %v1421_v40, %v1923_v24  ;;  %v691_v2 = vmul.f32 %v1913_v20, %v1424_v41 }
  0x84   : > { %v788_v28 = vmax.f32 %v772_v22, 0.0  ;;  %v773_v3 = vadd.f32 %v1926_v10, %v755_v55  ;;  %v757_v4 = vadd.f32 %v741_v1, %v723_v32  ;;  %v724_v61 = vadd.f32 %v708_v27, %v690_v59 }
  0x85   : > { %1026 = vst [vmem:[%s1458_s26 + $0x180] sm:$0xff] %v787_v18  ;;  %v774_v7 = vadd.f32 %v1926_v10, %v756_v23  ;;  %v709_v35 = vmul.f32 %v1435_v50, %v1920_v21  ;;  %v743_v9 = vmul.f32 %v1438_v51, %v1923_v24  ;;  %v692_v40 = vmul.f32 %v1913_v20, %v1441_v52 }
  0x86   : > { %1027 = vst [vmem:[%s1458_s26 + $0x188] sm:$0xff] %v788_v28  ;;  %v789_v41 = vmax.f32 %v773_v3, 0.0  ;;  %v775_v0 = vadd.f32 %v1926_v10, %v757_v4  ;;  %v758_v29 = vadd.f32 %v742_v19, %v724_v61  ;;  %v710_v31 = vmul.f32 %v1448_v57, %v1920_v21  ;;  %v2171_v4 = vld [vmem:[#allocation20_spill] sm:$0xff] }
  0x87   : > { %v790_v43 = vmax.f32 %v774_v7, 0.0  ;;  %v725_v13 = vadd.f32 %v709_v35, %v691_v2  ;;  %v744_v50 = vmul.f32 %v1452_v62, %v1923_v24  ;;  %v693_v51 = vmul.f32 %v1913_v20, %v1455_v63 }
  0x88   : > { %1028 = vst [vmem:[%s1458_s26 + $0x190] sm:$0xff] %v789_v41  ;;  %v791_v38 = vmax.f32 %v775_v0, 0.0  ;;  %v776_v52 = vadd.f32 %v1926_v10, %v758_v29  ;;  %v726_v14 = vadd.f32 %v710_v31, %v692_v40  ;;  %v711_v42 = vmul.f32 %v1469_v16, %v1920_v21 }
  0x89   : > { %1029 = vst [vmem:[%s1458_s26 + $0x198] sm:$0xff] %v790_v43  ;;  %v759_v15 = vadd.f32 %v743_v9, %v725_v13  ;;  %v745_v57 = vmul.f32 %v1476_v25, %v1923_v24  ;;  %v694_v62 = vmul.f32 %v1913_v20, %v1479_v26  ;;  %v712_v63 = vmul.f32 %v1482_v30, %v1920_v21 }
  0x8a   : > { %1030 = vst [vmem:[%s1458_s26 + $0x1a0] sm:$0xff] %v791_v38  ;;  %v792_v46 = vmax.f32 %v776_v52, 0.0  ;;  %v760_v34 = vadd.f32 %v744_v50, %v726_v14  ;;  %v727_v49 = vadd.f32 %v711_v42, %v693_v51  ;;  %v746_v1 = vmul.f32 %v1489_v37, %v1923_v24 }
  0x8b   : > { %v777_v16 = vadd.f32 %v1926_v10, %v759_v15  ;;  %v728_v56 = vadd.f32 %v712_v63, %v694_v62  ;;  %v695_v25 = vmul.f32 %v1913_v20, %v1496_v44  ;;  %v713_v26 = vmul.f32 %v1499_v45, %v1920_v21 }
  0x8c   : > { %1031 = vst [vmem:[%s1458_s26 + $0x1a8] sm:$0xff] %v792_v46  ;;  %v778_v30 = vadd.f32 %v1926_v10, %v760_v34  ;;  %v761_v59 = vadd.f32 %v745_v57, %v727_v49  ;;  %v747_v22 = vmul.f32 %v1509_v53, %v1923_v24  ;;  %v696_v37 = vmul.f32 %v1913_v20, %v1512_v54 }
  0x8d   : > { %v793_v55 = vmax.f32 %v777_v16, 0.0  ;;  %v762_v32 = vadd.f32 %v746_v1, %v728_v56  ;;  %v729_v27 = vadd.f32 %v713_v26, %v695_v25  ;;  %v714_v44 = vmul.f32 %v1518_v60, %v1920_v21 }
  0x8e   : > { %v794_v18 = vmax.f32 %v778_v30, 0.0  ;;  %v779_v45 = vadd.f32 %v1926_v10, %v761_v59  ;;  %v748_v23 = vmul.f32 %v1526_v12, %v1923_v24  ;;  %v697_v19 = vmul.f32 %v1913_v20, %v1529_v17 }
  0x8f   : > { %1032 = vst [vmem:[%s1458_s26 + $0x1b0] sm:$0xff] %v793_v55  ;;  %v780_v53 = vadd.f32 %v1926_v10, %v762_v32  ;;  %v763_v54 = vadd.f32 %v747_v22, %v729_v27  ;;  %v730_v2 = vadd.f32 %v714_v44, %v696_v37  ;;  %v715_v28 = vmul.f32 %v2153_v11, %v1920_v21 }
  0x90   : > { %1033 = vst [vmem:[%s1458_s26 + $0x1b8] sm:$0xff] %v794_v18  ;;  %v795_v60 = vmax.f32 %v779_v45, 0.0  ;;  %v749_v3 = vmul.f32 %v2162_v8, %v1923_v24  ;;  %v698_v12 = vmul.f32 %v1913_v20, %v2163_v39  ;;  %v716_v17 = vmul.f32 %v2171_v4, %v1920_v21 }
  0x91   : > { %v796_v61 = vmax.f32 %v780_v53, 0.0  ;;  %v781_v7 = vadd.f32 %v1926_v10, %v763_v54  ;;  %v764_v35 = vadd.f32 %v748_v23, %v730_v2  ;;  %v731_v9 = vadd.f32 %v715_v28, %v697_v19 }
  0x92   : > { %1034 = vst [vmem:[%s1458_s26 + $0x1c0] sm:$0xff] %v795_v60  ;;  %v732_v40 = vadd.f32 %v716_v17, %v698_v12  ;;  %v750_v11 = vmul.f32 %v1567_v5, %v1923_v24  ;;  %v699_v8 = vmul.f32 %v1913_v20, %v1570_v6  ;;  %v717_v39 = vmul.f32 %v2157_v36, %v1920_v21 }
  0x93   : > { %1035 = vst [vmem:[%s1458_s26 + $0x1c8] sm:$0xff] %v796_v61  ;;  %v797_v41 = vmax.f32 %v781_v7, 0.0  ;;  %v782_v0 = vadd.f32 %v1926_v10, %v764_v35  ;;  %v765_v29 = vadd.f32 %v749_v3, %v731_v9  ;;  %v751_v31 = vmul.f32 %v1585_v33, %v1923_v24 }
  0x94   : > { %v766_v43 = vadd.f32 %v750_v11, %v732_v40  ;;  %v733_v13 = vadd.f32 %v717_v39, %v699_v8  ;;  %v700_v5 = vmul.f32 %v1913_v20, %v1589_v47  ;;  %v718_v6 = vmul.f32 %v1592_v48, %v1920_v21 }
  0x95   : > { %1036 = vst [vmem:[%s1458_s26 + $0x1d0] sm:$0xff] %v797_v41  ;;  %v798_v36 = vmax.f32 %v782_v0, 0.0  ;;  %v783_v50 = vadd.f32 %v1926_v10, %v765_v29  ;;  %v752_v51 = vmul.f32 %v1602_v58, %v1923_v24 }
  0x96   : > { %v784_v33 = vadd.f32 %v1926_v10, %v766_v43  ;;  %v767_v38 = vadd.f32 %v751_v31, %v733_v13  ;;  %v734_v52 = vadd.f32 %v718_v6, %v700_v5 }
  0x97   : > { %1037 = vst [vmem:[%s1458_s26 + $0x1d8] sm:$0xff] %v798_v36  ;;  %v799_v47 = vmax.f32 %v783_v50, 0.0 }
  0x98   : > { %v800_v20 = vmax.f32 %v784_v33, 0.0  ;;  %v785_v48 = vadd.f32 %v1926_v10, %v767_v38  ;;  %v768_v21 = vadd.f32 %v752_v51, %v734_v52 }
  0x99   : > { %1038 = vst [vmem:[%s1458_s26 + $0x1e0] sm:$0xff] %v799_v47 }
  0x9a   : > { %1039 = vst [vmem:[%s1458_s26 + $0x1e8] sm:$0xff] %v800_v20  ;;  %v801_v14 = vmax.f32 %v785_v48, 0.0  ;;  %v786_v58 = vadd.f32 %v1926_v10, %v768_v21 }
  0x9c   : > { %1040 = vst [vmem:[%s1458_s26 + $0x1f0] sm:$0xff] %v801_v14  ;;  %v802_v24 = vmax.f32 %v786_v58, 0.0 }
  0x9e   : > { %1041 = vst [vmem:[%s1458_s26 + $0x1f8] sm:$0xff] %v802_v24 }
  0x9f   : > { %1162 = shalt.err (!%p1159_p9)
}
  0xa0   : > { %s1163_s21 = scalar_lea.hbm %s2063_s28, 8192  ;;  %s1167_s7 = scalar_lea.hbm %s2119_s3, 16384 }
  0xa1   : > { %p1164_p10 = scmp.ne.s32.totalorder %s2063_s28, %s1163_s21  ;;  %p1168_p13 = scmp.lt.s32.totalorder %s2063_s28, %s2119_s3 }
  0xa2   : > { %p1169_p0 = scmp.lt.s32.totalorder %s1167_s7, %s1163_s21 }
  0xa3   : > { %p1165_p11 = pnand %p1164_p10, %p1300_p4 }
  0xa4   : > { %p1170_p1 = por %p1169_p0, %p1168_p13 }
  0xa5   : > { %p1166_p12 = pneg %p1165_p11 }
  0xa7   : > { %p1171_p2 = pnand %p1170_p1, %p1166_p12 }
  0xa9   : > { %1174 = shalt.err (!%p1171_p2)
}
  0xaa   : > { %s1238_s10 = smov 128   ;;  %s1239_s11 = smov 8  }
  0xab   : > { %1057 = dma.vmem_to_hbm [thread:$0]  (%p1300_p4), %s2065_s19, 8192, %s2063_s28, %s2071_s15, %s1238_s10, %s1238_s10, %s1239_s11  }
  0xac PF: > { %p1074_p3 = scmp.ge.s32.totalorder %s1233_s17, 2  ;;  %s851_s18 = sand.u32 1, %s1213_s12  }
  0xad   : > { %s852_s23 = scalar_lea.sflag [#allocation3], %s851_s18 }
  0xae   : > { %p1067_p5 = pnand %p1074_p3, %p1307_p8 }
  0xb0   : > { %p1068_p6 = pneg %p1067_p5 }
  0xb2   : > { %1208 = dma.done.wait (%p1068_p6), %s852_s23, 8192  }
  0xb3   : > { %1210 = vsyncadd (%p1068_p6), %s852_s23, 4294959104  ;;  %s18_s17 = sadd.s32 1, %s1233_s17   ;;  %s2172_s12 = smov %s1217_s13 }
  0xb4   : > { %p15_p7 = scmp.ge.s32.totalorder %s18_s17, 4   ;;  %s2173_s13 = smov %s1221_s14 }
  0xb5   : > { %s2174_s14 = smov %s1313_s25  ;;  %s2175_s15 = smov %s1229_s16 }
  0xb6   : > { %s2176_s16 = smov %s2178_s20  ;;  %17 = sbr.rel (!%p15_p7) target bundleno = 6 (0x6), region = 81 }
  0xbb   :  { %857 = vsyncpa [#allocation3], 1 }
  0xbc   :  { %859 = vsyncpa [#allocation3 + $0x1], 1 }
  0xbd   :  { %860 = vsyncpa [#allocation4], 1 }
  0xbe   :  { %862 = vsyncpa [#allocation4 + $0x1], 1 }
  0xbf   :  { %863 = vsyncpa [#allocation6], 1 }

</bundles_post_ra>
